<compile_context>
chip_gen: v7x
topology: tpu7x:2x2x1
jax: 0.10.0
libtpu: 0.0.40
codegen_flags: <defaults>
</compile_context>

<pallas_src>
import functools
import math

import jax
import jax.numpy as jnp
from jax.experimental import pallas as pl
from jax.experimental.pallas import tpu as pltpu


# ---------------------------------------------------------------------------
# Small helpers
# ---------------------------------------------------------------------------

def _round_up(n, m):
    return ((n + m - 1) // m) * m


def _pick_tile(n, max_tile, min_tile=128):
    """Choose a tile for an axis of length n.  Returns (tile, padded_n).

    Prefers the whole axis when it already fits; otherwise the largest
    multiple-of-8 divisor of n in [min_tile, max_tile]; if none exists we use
    max_tile and PAD (caller masks / slices the tail) instead of silently
    falling back to tile == n (VMEM blow-up trap for awkward lengths).
    """
    if n <= max_tile:
        return n, n
    mt8 = max(8, (max_tile // 8) * 8)
    t = mt8
    while t >= min_tile:
        if n % t == 0:
            return t, n
        t -= 8
    return mt8, _round_up(n, mt8)


def _pad_axis(x, target, axis):
    if x.shape[axis] == target:
        return x
    pad = [(0, 0)] * x.ndim
    pad[axis] = (0, target - x.shape[axis])
    return jnp.pad(x, pad)


def _vmem_limit(estimate_bytes):
    """Scoped-VMEM request: 2x the static block footprint, at least 32 MiB,
    capped well under v7x's 64 MiB physical VMEM."""
    return int(min(max(2 * estimate_bytes, 32 << 20), 56 << 20))


def _resident_spec(block_shape, index_map):
    """BlockSpec for grid-invariant operands (weights / biases).

    Single-buffered: the block index never changes, so the default second
    pipeline buffer would only waste VMEM.
    """
    try:
        return pl.BlockSpec(block_shape, index_map, pipeline_mode=pl.Buffered(1))
    except (TypeError, AttributeError):  # older jax without pipeline_mode
        return pl.BlockSpec(block_shape, index_map)


# ---------------------------------------------------------------------------
# Projection kernel: y = x @ W + b  (run once per projection, not per q tile)
# ---------------------------------------------------------------------------

def _linear_kernel(x_ref, w_ref, b_ref, o_ref):
    # f32 accumulation on the MXU; result stored in bf16.
    o_ref[...] = (jnp.dot(x_ref[...], w_ref[...],
                          preferred_element_type=jnp.float32)
                  + b_ref[...]).astype(o_ref.dtype)


def _linear_bf16(x, w, b, *, max_rows=512):
    """(..., d_in) @ (d_in, d_out) + (1, d_out) -> bf16, rows tiled."""
    d_in = x.shape[-1]
    d_out = w.shape[1]
    x2 = x.reshape(-1, d_in)
    m = x2.shape[0]
    tm, m_pad = _pick_tile(m, max_rows)
    x2 = _pad_axis(x2, m_pad, axis=0)

    # TODO(synk): tile the d_model axes of the weight for very large d_model
    # (weight itself larger than VMEM).
    est = (2 * tm * d_in * 2        # double-buffered input tiles (bf16)
           + 2 * tm * d_out * 2     # double-buffered output tiles (bf16)
           + d_in * d_out * 2       # single-buffered weight (bf16)
           + max(d_out, 128) * 4    # bias
           + tm * d_out * 4)        # f32 matmul result before the cast

    y = pl.pallas_call(
        _linear_kernel,
        out_shape=jax.ShapeDtypeStruct((m_pad, d_out), jnp.bfloat16),
        grid=(m_pad // tm,),
        in_specs=[pl.BlockSpec((tm, d_in), lambda i: (i, 0)),
                  _resident_spec((d_in, d_out), lambda i: (0, 0)),
                  _resident_spec((1, d_out), lambda i: (0, 0))],
        out_specs=pl.BlockSpec((tm, d_out), lambda i: (i, 0)),
        compiler_params=pltpu.CompilerParams(
            dimension_semantics=("parallel",),
            vmem_limit_bytes=_vmem_limit(est)),
    )(x2, w, b)
    return y[:m].reshape(x.shape[:-1] + (d_out,))


# ---------------------------------------------------------------------------
# Flash-style attention + fused output projection
# ---------------------------------------------------------------------------

def _mha_flash_kernel(q_ref, k_ref, v_ref, wo_ref, bo_ref, o_ref,
                      acc_sc, m_sc, l_sc, *, num_heads, d_k, s_kv, tk):
    """One (batch, query-tile, kv-tile) grid step.

    q_ref: (TQ, D) bf16 projected queries, pre-scaled by 1/sqrt(d_k)
    k_ref, v_ref: (TK, D) bf16 projected keys / values
    wo_ref: (D, D) bf16 fc weight; bo_ref: (1, D) f32 fc bias
    acc_sc: (H, TQ, d_k) f32 and m_sc, l_sc: (H, TQ, 1) f32 online-softmax state.
    """
    f32 = jnp.float32
    bf16 = jnp.bfloat16
    kv = pl.program_id(2)

    @pl.when(kv == 0)
    def _init():
        acc_sc[...] = jnp.zeros(acc_sc.shape, f32)
        m_sc[...] = jnp.full(m_sc.shape, -jnp.inf, f32)
        l_sc[...] = jnp.zeros(l_sc.shape, f32)

    q = q_ref[...]                    # (TQ, D)
    k = k_ref[...]                    # (TK, D)
    v = v_ref[...]                    # (TK, D)
    kt = k.T                          # (D, TK): one XLU transpose per step, not per head

    # Mask the zero-padded tail of the KV axis (only exists if tk doesn't divide s_kv).
    needs_mask = (s_kv % tk) != 0
    if needs_mask:
        col = jax.lax.broadcasted_iota(jnp.int32, (q.shape[0], tk), 1)
        valid = (kv * tk + col) < s_kv

    for h in range(num_heads):
        sl = slice(h * d_k, (h + 1) * d_k)
        # scores already carry the 1/sqrt(d_k) scale (folded into Wq / bq).
        s = jnp.dot(q[:, sl], kt[sl, :], preferred_element_type=f32)   # (TQ, TK)
        if needs_mask:
            s = jnp.where(valid, s, -jnp.inf)
        m_prev = m_sc[h]                                               # (TQ, 1)
        m_new = jnp.maximum(m_prev, jnp.max(s, axis=-1, keepdims=True))
        alpha = jnp.exp(m_prev - m_new)
        p = jnp.exp(s - m_new)
        l_sc[h] = alpha * l_sc[h] + jnp.sum(p, axis=-1, keepdims=True)
        acc_sc[h] = alpha * acc_sc[h] + jnp.dot(p.astype(bf16), v[:, sl],
                                                preferred_element_type=f32)
        m_sc[h] = m_new

    @pl.when(kv == pl.num_programs(2) - 1)
    def _finalize():
        heads = []
        for h in range(num_heads):
            inv = pl.reciprocal(l_sc[h], approx=True)          # EUP slot
            heads.append((acc_sc[h] * inv).astype(bf16))
        ctx = jnp.concatenate(heads, axis=-1)                  # (TQ, D) bf16
        # Single deep-K (K = d_model) output projection on the MXU.
        out = jnp.dot(ctx, wo_ref[...], preferred_element_type=f32) + bo_ref[...]
        o_ref[...] = out.astype(o_ref.dtype)


def _flash_attention(qp, kp, vp, wo, bo, *, num_heads, d_k,
                     q_tile=256, kv_tile=512, out_dtype=jnp.float32):
    B, s_q, D = qp.shape
    s_kv = kp.shape[1]

    tq, sq_pad = _pick_tile(s_q, q_tile)
    tk, skv_pad = _pick_tile(s_kv, kv_tile)
    qp = _pad_axis(qp, sq_pad, axis=1)
    kp = _pad_axis(kp, skv_pad, axis=1)
    vp = _pad_axis(vp, skv_pad, axis=1)
    n_q = sq_pad // tq
    n_kv = skv_pad // tk

    kernel = functools.partial(_mha_flash_kernel, num_heads=num_heads, d_k=d_k,
                               s_kv=s_kv, tk=tk)

    est = (2 * tq * D * 2                           # q tiles (bf16, 2 buffers)
           + 2 * 2 * tk * D * 2                     # k + v tiles (bf16, 2 buffers)
           + 2 * tq * D * 4                         # output tiles (f32, 2 buffers)
           + D * D * 2 + max(D, 128) * 4            # wo + bo (single-buffered)
           + num_heads * tq * max(d_k, 128) * 4     # acc scratch
           + 2 * num_heads * tq * 128 * 4           # m / l scratch (lane padded)
           + 4 * tq * tk * 4)                       # scores / probs intermediates

    out = pl.pallas_call(
        kernel,
        out_shape=jax.ShapeDtypeStruct((B, sq_pad, D), out_dtype),
        grid=(B, n_q, n_kv),
        in_specs=[
            pl.BlockSpec((None, tq, D), lambda b, i, j: (b, i, 0)),
            pl.BlockSpec((None, tk, D), lambda b, i, j: (b, j, 0)),
            pl.BlockSpec((None, tk, D), lambda b, i, j: (b, j, 0)),
            _resident_spec((D, D), lambda b, i, j: (0, 0)),
            _resident_spec((1, D), lambda b, i, j: (0, 0)),
        ],
        out_specs=pl.BlockSpec((None, tq, D), lambda b, i, j: (b, i, 0)),
        scratch_shapes=[pltpu.VMEM((num_heads, tq, d_k), jnp.float32),
                        pltpu.VMEM((num_heads, tq, 1), jnp.float32),
                        pltpu.VMEM((num_heads, tq, 1), jnp.float32)],
        compiler_params=pltpu.CompilerParams(
            # batch & query-tile axes feed both v7x TensorCores; the kv axis
            # carries the online-softmax accumulator -> "arbitrary".
            dimension_semantics=("parallel", "parallel", "arbitrary"),
            vmem_limit_bytes=_vmem_limit(est)),
    )(qp, kp, vp, wo, bo)
    return out[:, :s_q, :]


# ---------------------------------------------------------------------------
# Public forward, reference, and parameter init
# ---------------------------------------------------------------------------

def multi_head_attention(v, k, q, params, num_heads, *, q_tile=256, kv_tile=512):
    """Pallas forward matching PyTorch MultiHeadAttention.

    v, k, q: (B, S, d_model) float32.
    params: pre-transposed weights W (d_in, d_out) (= torch_linear.weight.T)
    and biases b (1, d_out), all float32, ordered (value, key, query, fc).
    q_tile defaults to 256 (fits v7x's 64 MiB VMEM); raise toward 512 on v5e/v6e.
    """
    wv, bv, wk, bk, wq, bq, wo, bo = params
    D = q.shape[-1]
    assert D % num_heads == 0
    d_k = D // num_heads
    bf16 = jnp.bfloat16
    f32 = jnp.float32

    # Fold the 1/sqrt(d_k) attention scale into the query projection.
    scale = 1.0 / math.sqrt(d_k)

    # bf16 activations / weights at the call boundary; projections run once.
    qp = _linear_bf16(q.astype(bf16), (wq * scale).astype(bf16), (bq * scale).astype(f32))
    kp = _linear_bf16(k.astype(bf16), wk.astype(bf16), bk.astype(f32))
    vp = _linear_bf16(v.astype(bf16), wv.astype(bf16), bv.astype(f32))

    # TODO(synk): optionally emit a bf16 output (halves writeback, relevant on
    # v5e) when the surrounding model tolerates it.
    return _flash_attention(qp, kp, vp, wo.astype(bf16), bo.astype(f32),
                            num_heads=num_heads, d_k=d_k,
                            q_tile=q_tile, kv_tile=kv_tile, out_dtype=f32)


def reference_mha(v, k, q, params, num_heads):
    """Pure-JAX f32 reference mirroring the PyTorch module."""
    wv, bv, wk, bk, wq, bq, wo, bo = params
    B, S, D = v.shape
    d_k = D // num_heads
    vp = v @ wv + bv
    kp = k @ wk + bk
    qp = q @ wq + bq

    def split(x):
        return x.reshape(B, S, num_heads, d_k).transpose(0, 2, 1, 3)  # (B,H,S,dk)

    qh, kh, vh = split(qp), split(kp), split(vp)
    scores = jnp.einsum('bhqd,bhkd->bhqk', qh, kh) / math.sqrt(d_k)
    probs = jax.nn.softmax(scores, axis=-1)
    out = jnp.einsum('bhqk,bhkd->bhqd', probs, vh)
    out = out.transpose(0, 2, 1, 3).reshape(B, S, D)
    return out @ wo + bo


def init_params(key, d_model):
    """Deterministic synthetic params (pre-transposed: W (in, out), b (1, out))."""
    ks = jax.random.split(key, 8)

    def w(kk):
        return jax.random.normal(kk, (d_model, d_model), jnp.float32) * 0.1

    def b(kk):
        return jax.random.normal(kk, (1, d_model), jnp.float32) * 0.1

    return (w(ks[0]), b(ks[1]),   # value
            w(ks[2]), b(ks[3]),   # key
            w(ks[4]), b(ks[5]),   # query
            w(ks[6]), b(ks[7]))   # fc


def _check(out, ref, name):
    if not jnp.allclose(out, ref, atol=3e-2, rtol=3e-2):
        max_err = float(jnp.max(jnp.abs(out - ref)))
        raise AssertionError(f"{name}: Pallas MHA mismatch vs reference (max err {max_err})")


if __name__ == "__main__":
    B, S, d_model, num_heads = 2, 8, 32, 4

    root = jax.random.PRNGKey(0)
    kv_key, kk_key, kq_key, kp_key = jax.random.split(root, 4)
    v = jax.random.normal(kv_key, (B, S, d_model), jnp.float32)
    k = jax.random.normal(kk_key, (B, S, d_model), jnp.float32)
    q = jax.random.normal(kq_key, (B, S, d_model), jnp.float32)
    params = init_params(kp_key, d_model)

    out = jax.block_until_ready(multi_head_attention(v, k, q, params, num_heads))
    ref = jax.block_until_ready(reference_mha(v, k, q, params, num_heads))
    assert out.shape == (B, S, d_model)
    _check(out, ref, "single-block")

    # Also exercise the flash path (multiple KV blocks + masked padded tail) by
    # forcing tiny tiles on a sequence length that does not divide the tile.
    S2 = 20
    v2 = jax.random.normal(kv_key, (B, S2, d_model), jnp.float32)
    k2 = jax.random.normal(kk_key, (B, S2, d_model), jnp.float32)
    q2 = jax.random.normal(kq_key, (B, S2, d_model), jnp.float32)
    out2 = jax.block_until_ready(
        multi_head_attention(v2, k2, q2, params, num_heads, q_tile=8, kv_tile=8))
    ref2 = jax.block_until_ready(reference_mha(v2, k2, q2, params, num_heads))
    assert out2.shape == (B, S2, d_model)
    _check(out2, ref2, "tiled/masked")

    print("KERNEL_OK")
</pallas_src>

<mosaic_0001>
module attributes {stable_mosaic.version = 11 : i64} {
  func.func @_linear_kernel(%arg0: i32, %arg1: memref<16x32xbf16, #tpu.memory_space<vmem>>, %arg2: memref<32x32xbf16, #tpu.memory_space<vmem>>, %arg3: memref<1x32xf32, #tpu.memory_space<vmem>>, %arg4: memref<16x32xbf16, #tpu.memory_space<vmem>>) attributes {dimension_semantics = [#tpu.dimension_semantics<parallel>], iteration_bounds = array<i64: 1>, scalar_prefetch = 0 : i64, scratch_operands = 0 : i64, tpu.core_type = #tpu.core_type<tc>, window_params = [{transform_indices = @transform_0, window_bounds = array<i64: 16, 32>}, {pipeline_mode = #tpu.pipeline_mode<synchronous>, transform_indices = @transform_1, window_bounds = array<i64: 32, 32>}, {pipeline_mode = #tpu.pipeline_mode<synchronous>, transform_indices = @transform_2, window_bounds = array<i64: 1, 32>}, {transform_indices = @transform_3, window_bounds = array<i64: 16, 32>}]} {
    %c0 = arith.constant 0 : index
    %c0_0 = arith.constant 0 : index
    %0 = vector.load %arg1[%c0, %c0_0] : memref<16x32xbf16, #tpu.memory_space<vmem>>, vector<16x32xbf16>
    %c0_1 = arith.constant 0 : index
    %c0_2 = arith.constant 0 : index
    %1 = vector.load %arg2[%c0_1, %c0_2] : memref<32x32xbf16, #tpu.memory_space<vmem>>, vector<32x32xbf16>
    %cst = arith.constant dense<0.000000e+00> : vector<16x32xf32>
    %2 = tpu.matmul %0, %1, %cst {dimension_numbers = #tpu.dot_dimension_numbers<[1], [0], [0], [1], [0, 0, 1, 1], [], []>} : vector<16x32xbf16>, vector<32x32xbf16>, vector<16x32xf32> -> vector<16x32xf32>
    %c0_3 = arith.constant 0 : index
    %c0_4 = arith.constant 0 : index
    %3 = vector.load %arg3[%c0_3, %c0_4] : memref<1x32xf32, #tpu.memory_space<vmem>>, vector<1x32xf32>
    %4 = vector.broadcast %3 : vector<1x32xf32> to vector<16x32xf32>
    %5 = arith.addf %2, %4 : vector<16x32xf32>
    %6 = arith.truncf %5 : vector<16x32xf32> to vector<16x32xbf16>
    %c0_5 = arith.constant 0 : index
    %c0_6 = arith.constant 0 : index
    %7 = vector.load %arg4[%c0_5, %c0_6] : memref<16x32xbf16, #tpu.memory_space<vmem>>, vector<16x32xbf16>
    tpu.vector_store %arg4[%c0_5, %c0_6], %6 {strides = array<i32>} : memref<16x32xbf16, #tpu.memory_space<vmem>>, vector<16x32xbf16>,
    return
  }
  func.func @transform_0(%arg0: i32) -> (i32, i32) {
    %c0_i32 = arith.constant 0 : i32
    %c0_i32_0 = arith.constant 0 : i32
    return %arg0, %c0_i32 : i32, i32
  }
  func.func @transform_1(%arg0: i32) -> (i32, i32) {
    %c0_i32 = arith.constant 0 : i32
    %c0_i32_0 = arith.constant 0 : i32
    %c0_i32_1 = arith.constant 0 : i32
    return %c0_i32, %c0_i32_0 : i32, i32
  }
  func.func @transform_2(%arg0: i32) -> (i32, i32) {
    %c0_i32 = arith.constant 0 : i32
    %c0_i32_0 = arith.constant 0 : i32
    %c0_i32_1 = arith.constant 0 : i32
    return %c0_i32, %c0_i32_0 : i32, i32
  }
  func.func @transform_3(%arg0: i32) -> (i32, i32) {
    %c0_i32 = arith.constant 0 : i32
    %c0_i32_0 = arith.constant 0 : i32
    return %arg0, %c0_i32 : i32, i32
  }
}

</mosaic_0001>

<bundles_post_ra>
// kernel: tpu_custom_call.1
= control target key start
LH: loop header
LB: loop body
LE: loop exit
PB: predicated region body
PF: predicated region fallthrough
CT: control target
= control target key end

     0   :  { %8 = vsyncpa [#allocation3], 0  ;;  %s325_s0 = inlined_call_operand.hbm [shape: bf16[16,32], index: 0, kind: input, shape index: {}]   ;;  %s326_s1 = inlined_call_operand.hbm [shape: bf16[32,32], index: 1, kind: input, shape index: {}]   ;;  %s327_s2 = inlined_call_operand.vmem [shape: f32[1,32], index: 2, kind: input, shape index: {}]   ;;  %s328_s3 = inlined_call_operand.hbm [shape: bf16[16,32], index: 3, kind: output, shape index: {}]  }
   0x1   :  { %9 = vsyncpa [#allocation6], 0 }
   0x2   :  { %10 = vsyncpa [#allocation4], 0  ;;  %s250_s12 = smov [#allocation2]   ;;  %s178_s16 = scalar_lea.hbm %s325_s0, 128 }
   0x3   :  { %s16_s13 = sshll.u32 %s250_s12, 4  ;;  %p179_p0 = scmp.ne.s32.totalorder %s325_s0, %s178_s16  ;;  %s17_s13 = int_to_ptr.vmem [resolvable:$true] %s16_s13 }
   0x4   :  { %p182_p1 = scmp.lt.u32.totalorder %s178_s16, %s325_s0 }
   0x6   :  { %p184_p2 = pnand %p182_p1, %p179_p0 }
   0x8   :  { %187 = shalt.err (!%p184_p2)
}
   0x9   :  { %s188_s21 = scalar_lea.vmem %s17_s13, 128  ;;  %p193_p4 = scmp.lt.s32.totalorder %s17_s13, %s17_s13 }
   0xa   :  { %p189_p3 = scmp.ne.s32.totalorder %s17_s13, %s188_s21  ;;  %p194_p5 = scmp.lt.s32.totalorder %s188_s21, %s188_s21 }
   0xc   :  { %p195_p6 = por %p194_p5, %p193_p4 }
   0xe   :  { %p196_p7 = pnand %p195_p6, %p189_p3 }
  0x10   :  { %199 = shalt.err (!%p196_p7)
}
  0x11   :  { %s251_s22 = smov 64   ;;  %s252_s23 = smov 4  }
  0x12   :  { %22 = dma.hbm_to_vmem [thread:$0]  %s325_s0, 128, %s17_s13, [#allocation3], %s251_s22, %s251_s22, %s252_s23  }
  0x13   :  { %s253_s26 = smov [#allocation5]   ;;  %s200_s30 = scalar_lea.hbm %s326_s1, 256 }
  0x14   :  { %s28_s27 = sshll.u32 %s253_s26, 4  ;;  %p201_p8 = scmp.ne.s32.totalorder %s326_s1, %s200_s30  ;;  %s29_s27 = int_to_ptr.vmem [resolvable:$true] %s28_s27 }
  0x15   :  { %p204_p9 = scmp.lt.u32.totalorder %s200_s30, %s326_s1 }
  0x17   :  { %p206_p10 = pnand %p204_p9, %p201_p8 }
  0x19   :  { %209 = shalt.err (!%p206_p10)
}
  0x1a   :  { %s210_s8 = scalar_lea.vmem %s29_s27, 256  ;;  %p215_p12 = scmp.lt.s32.totalorder %s29_s27, %s29_s27 }
  0x1b   :  { %p211_p11 = scmp.ne.s32.totalorder %s29_s27, %s210_s8  ;;  %p216_p13 = scmp.lt.s32.totalorder %s210_s8, %s210_s8 }
  0x1d   :  { %p217_p0 = por %p216_p13, %p215_p12 }
  0x1f   :  { %p218_p1 = pnand %p217_p0, %p211_p11 }
  0x21   :  { %221 = shalt.err (!%p218_p1)
}
  0x22   :  { %34 = dma.hbm_to_vmem [thread:$0]  %s326_s1, 256, %s29_s27, [#allocation6], %s251_s22, %s251_s22, %s252_s23  }
  0x23   :  { %244 = dma.done.wait [#allocation3], 128  }
  0x24   :  { %245 = vsyncadd [#allocation3], 4294967168 }
  0x25   :  { %246 = dma.done.wait [#allocation6], 256  }
  0x26   :  { %247 = vsyncadd [#allocation6], 4294967040  ;;  %v254_v0 = vmov 0.0   ;;  %vm255_vm0 = vmmov 0   ;;  %v175_v1 = vld [vmem:[#allocation5] sm:$0xff]   ;;  %v176_v2 = vld [vmem:[#allocation5 + $0x8] sm:$0xff]  }
  0x27   :  { %160 = vmatprep.subr.bf16.mxu0 %v254_v0  ;;  %164 = vmatprep.mubr.msk.bf16.mxu0 %vm255_vm0, %v254_v0  ;;  %v177_v3 = vld [vmem:[#allocation2] sm:$0xff]   ;;  %vm74_vm1 = vcmask 261120   ;;  %vm127_vm2 = vcmask 257024   ;;  %s256_s1 = smov [#allocation7]  }
  0x28   :  { %161 = vmatpush3.bf16.msra.mxu0 %v175_v1  ;;  %v148_v4 = vld [vmem:[%s327_s2] ss:$0 sm:$0xff]  ;;  %s135_s12 = sshll.u32 %s256_s1, 4  ;;  %s136_s12 = int_to_ptr.vmem [resolvable:$true] %s135_s12 }
  0x29   :  { %162 = vmatprep.subr.bf16.mxu0 %v254_v0  ;;  %s222_s13 = scalar_lea.vmem %s136_s12, 128  ;;  %p227_p3 = scmp.lt.s32.totalorder %s136_s12, %s136_s12 }
  0x2a   :  { %p223_p2 = scmp.ne.s32.totalorder %s136_s12, %s222_s13  ;;  %p228_p4 = scmp.lt.s32.totalorder %s222_s13, %s222_s13 }
  0x2c   :  { %163 = vmatpush3.bf16.msra.mxu0 %v176_v2  ;;  %p229_p5 = por %p228_p4, %p227_p3 }
  0x2e   :  { %p230_p6 = pnand %p229_p5, %p223_p2 }
  0x2f   :  { %165 = vmatmul.mubr.msk.bf16.vlgmr.msra.gmra.mrb[0].mxu0 %vm74_vm1, %v177_v3 }
 0x102   :  { %v112_v5 = vpop.f32.mrb[0].mxu0 }
 0x103   :  { %v113_v6 = vadd.f32 %v148_v4, %v112_v5  ;;  %v166_v7 = vpop.f32.mrb[1].mxu0 }
 0x104   :  { %v115_v8 = vpop.f32.mrb[2].mxu0 }
 0x105   :  { %v155_v9 = vpack.c.bf16 %v113_v6, %v113_v6  ;;  %v116_v10 = vadd.f32 %v148_v4, %v115_v8  ;;  %v167_v11 = vpop.f32.mrb[3].mxu0 }
 0x107   :  { %v156_v12 = vpack.c.bf16 %v116_v10, %v116_v10  ;;  %128 = vst.msk [vmem:[#allocation7] sm:$0xf] %vm127_vm2, %v155_v9 }
 0x109   :  { %129 = vst.msk [vmem:[#allocation7 + $0x4] sm:$0xf] %vm127_vm2, %v156_v12 }
 0x10a   :  { %233 = shalt.err (!%p230_p6)
}
 0x10b   :  { %s234_s15 = scalar_lea.hbm %s328_s3, 128 }
 0x10c   :  { %p235_p7 = scmp.ne.s32.totalorder %s328_s3, %s234_s15  ;;  %p238_p8 = scmp.lt.u32.totalorder %s234_s15, %s328_s3 }
 0x10e   :  { %p240_p9 = pnand %p238_p8, %p235_p7 }
 0x110   :  { %243 = shalt.err (!%p240_p9)
}
 0x111   :  { %141 = dma.vmem_to_hbm [thread:$0]  %s136_s12, 128, %s328_s3, [#allocation4], %s251_s22, %s251_s22, %s252_s23  }
 0x112   :  { %248 = dma.done.wait [#allocation4], 128  }
 0x113   :  { %249 = vsyncadd [#allocation4], 4294967168 }
 0x114   :  { %145 = vsyncpa [#allocation3], 1 }
 0x115   :  { %146 = vsyncpa [#allocation6], 1 }
 0x116   :  { %147 = vsyncpa [#allocation4], 1 }

</bundles_post_ra>
